<compile_context>
chip_gen: v5e
topology: v5e:2x2
jax: 0.10.0
libtpu: 0.0.40
codegen_flags: <defaults>
</compile_context>

<pallas_src>
import math
import numpy as np
import jax
import jax.numpy as jnp
from jax import lax
from jax.experimental import pallas as pl
from jax.experimental.pallas import tpu as pltpu

# ------------------------- configuration ------------------------------------
B = 2            # batch
IN_CH1 = 4       # channels of x1 (the tensor that gets upsampled)
IN_CH2 = 4       # channels of x2 (skip connection)
OUT_CH = 8       # DoubleConv output channels
H1, W1 = 8, 8    # x1 spatial
H2, W2 = 16, 16  # x2 spatial (= 2 * x1 spatial, so F.pad amounts are zero)
CTOT = IN_CH1 + IN_CH2
P1 = H1 * W1     # 64
P2 = H2 * W2     # 256
NCAT = B * CTOT  # 16 rows of the concatenated slab
R = B * OUT_CH   # 16 output rows of the (rows, lanes) slab
ONE_ROWS = 8     # ones block used to fold biases (8 keeps sublane alignment)
BN_EPS = 1e-5

# Roll amount (jnp.roll semantics: out[p] = in[(p - shift) % P2]) for each
# 3x3 tap k = dy*3 + dx.  We want out[p] = in[p + (dy-1)*W2 + (dx-1)].
ROLL_SHIFTS = tuple((-((dy - 1) * W2 + (dx - 1))) % P2
                    for dy in range(3) for dx in range(3))


# ------------------------------ kernel ---------------------------------------
def up_kernel(x1_ref, x2_ref, ut_ref, mask_ref, w1_ref, w2_ref, wid_ref, out_ref):
    f32 = jnp.float32

    # Bilinear 2x upsample (align_corners=True) of every (b, c) row at once:
    # (B*C1, 64) @ (64, 256) -> (B*C1, 256).  Exact, no gathers.
    up = jnp.dot(x1_ref[...], ut_ref[...], preferred_element_type=f32)

    # torch.cat([x2, x1_up], dim=1): the (batch, channel) row ordering is
    # absorbed into the column layout baked into the weights.
    cat = jnp.concatenate([x2_ref[...], up], axis=0)          # (NCAT, 256)

    masks = mask_ref[...]                                     # (9, 1, 256) 0/1
    ones_blk = jnp.ones((ONE_ROWS, P2), f32)                  # bias rows

    def conv3x3(x, w):
        # 3x3 conv = 9 lane rolls (XLU) + boundary masks (VPU), stacked on the
        # sublane axis, then ONE channel/tap-mixing MXU matmul.  Bias is
        # folded into `w` via the trailing ones block.
        slabs = []
        for k in range(9):
            sh = ROLL_SHIFTS[k]
            s = x if sh == 0 else pltpu.roll(x, shift=sh, axis=1)
            if k != 4:                       # center tap needs no boundary mask
                s = s * masks[k]             # zero out wrapped / padded pixels
            slabs.append(s)
        slabs.append(ones_blk)
        stacked = jnp.concatenate(slabs, axis=0)              # (9*rows + 8, 256)
        return jnp.dot(w, stacked, preferred_element_type=f32)  # (R, 256)

    h1 = jnp.maximum(conv3x3(cat, w1_ref[...]), 0.0)          # conv1 + BN1, ReLU
    h2 = conv3x3(h1, w2_ref[...])                             # conv2 + BN2
    idt = jnp.dot(wid_ref[...],
                  jnp.concatenate([cat, ones_blk], axis=0),
                  preferred_element_type=f32)                 # 1x1 conv + BN
    out_ref[...] = jnp.maximum(h2 + idt, 0.0).astype(out_ref.dtype)


# --------------------- wrapper-side constant construction --------------------
def _upsample_matrix(n_in, n_out):
    """(n_out, n_in) bilinear interpolation matrix, align_corners=True."""
    A = np.zeros((n_out, n_in), np.float64)
    for i in range(n_out):
        src = i * (n_in - 1) / (n_out - 1) if n_out > 1 else 0.0
        i0 = min(int(np.floor(src)), n_in - 1)
        i1 = min(i0 + 1, n_in - 1)
        f = src - i0
        A[i, i0] += 1.0 - f
        A[i, i1] += f
    return A


def _tap_masks(H, W):
    """mask[k, 0, i*W+j] = 1 iff the 3x3 tap k source pixel is in-bounds."""
    m = np.zeros((9, 1, H * W), np.float32)
    for dy in range(3):
        for dx in range(3):
            k = dy * 3 + dx
            for i in range(H):
                for j in range(W):
                    if 0 <= i + dy - 1 < H and 0 <= j + dx - 1 < W:
                        m[k, 0, i * W + j] = 1.0
    return m


def _fold_bn(w, b, gamma, beta, mean, var):
    """Fold eval-mode BatchNorm into a preceding conv (weight (O,I,kh,kw), bias (O,))."""
    scale = gamma / np.sqrt(var + BN_EPS)
    return w * scale[:, None, None, None], (b - mean) * scale + beta


def pack_weights(p):
    pn = {k: np.asarray(v, np.float64) for k, v in p.items()}
    w1f, b1f = _fold_bn(pn["w1"], pn["cb1"], pn["g1"], pn["be1"], pn["m1"], pn["v1"])
    w2f, b2f = _fold_bn(pn["w2"], pn["cb2"], pn["g2"], pn["be2"], pn["m2"], pn["v2"])
    widf, bidf = _fold_bn(pn["wid"], pn["cbid"], pn["gid"], pn["beid"], pn["mid"], pn["vid"])
    widf = widf[:, :, 0, 0]                                   # 1x1 conv -> (O, I)

    # Row layout of `cat` inside the kernel:
    #   rows [0, B*IN_CH2)       : x2,           ordered (b, c)
    #   rows [B*IN_CH2, NCAT)    : upsampled x1, ordered (b, c)
    def col_of(b, ch):
        if ch < IN_CH2:
            return b * IN_CH2 + ch
        return B * IN_CH2 + b * IN_CH1 + (ch - IN_CH2)

    # Stacked-slab weight matrices (tap-major column blocks) + bias columns.
    W1m = np.zeros((R, 9 * NCAT + ONE_ROWS), np.float64)
    W2m = np.zeros((R, 9 * R + ONE_ROWS), np.float64)
    Widm = np.zeros((R, NCAT + ONE_ROWS), np.float64)
    for b in range(B):
        rows = slice(b * OUT_CH, (b + 1) * OUT_CH)
        for ch in range(CTOT):
            Widm[rows, col_of(b, ch)] = widf[:, ch]
        Widm[rows, NCAT] = bidf                # bias via ones block (col 0 of it)
        W1m[rows, 9 * NCAT] = b1f
        W2m[rows, 9 * R] = b2f
        for k in range(9):
            dy, dx = k // 3, k % 3
            for ch in range(CTOT):
                W1m[rows, k * NCAT + col_of(b, ch)] = w1f[:, ch, dy, dx]
            for c in range(OUT_CH):
                W2m[rows, k * R + b * OUT_CH + c] = w2f[:, c, dy, dx]

    A_h = _upsample_matrix(H1, H2)
    A_w = _upsample_matrix(W1, W2)
    UT = np.kron(A_h, A_w).T                                  # (P1, P2)

    f32 = jnp.float32
    return dict(ut=jnp.asarray(UT, f32),
                mask=jnp.asarray(_tap_masks(H2, W2), f32),    # (9, 1, P2), 9 KB
                w1=jnp.asarray(W1m, f32), w2=jnp.asarray(W2m, f32),
                wid=jnp.asarray(Widm, f32))


def up_forward(x1, x2, packed):
    x1_flat = x1.reshape(B * IN_CH1, P1)        # rows = (b, c), lanes = h*w
    x2_flat = x2.reshape(B * IN_CH2, P2)

    def vmem():
        return pl.BlockSpec(memory_space=pltpu.MemorySpace.VMEM)

    # Grid-less call: everything fits trivially in VMEM, so no pipeline / no
    # double-buffering machinery is paid for.
    out_flat = pl.pallas_call(
        up_kernel,
        out_shape=jax.ShapeDtypeStruct((R, P2), jnp.float32),
        in_specs=[vmem() for _ in range(7)],
        out_specs=vmem(),
    )(x1_flat, x2_flat, packed["ut"], packed["mask"],
      packed["w1"], packed["w2"], packed["wid"])
    return out_flat.reshape(B, OUT_CH, H2, W2)


# ------------------------------ init & reference -----------------------------
def init_raw_params(key):
    ks = jax.random.split(key, 16)

    def conv_w(k, cout, cin, kh, kw):
        bound = 1.0 / math.sqrt(cin * kh * kw)
        return jax.random.uniform(k, (cout, cin, kh, kw), jnp.float32, -bound, bound)

    def conv_b(k, cout, cin, kh, kw):
        bound = 1.0 / math.sqrt(cin * kh * kw)
        return jax.random.uniform(k, (cout,), jnp.float32, -bound, bound)

    def bn(k, c):
        k1, k2, k3, k4 = jax.random.split(k, 4)
        return (jax.random.uniform(k1, (c,), jnp.float32, 0.5, 1.5),   # gamma
                0.1 * jax.random.normal(k2, (c,), jnp.float32),        # beta
                0.1 * jax.random.normal(k3, (c,), jnp.float32),        # running mean
                jax.random.uniform(k4, (c,), jnp.float32, 0.5, 1.5))   # running var

    g1, be1, m1, v1 = bn(ks[2], OUT_CH)
    g2, be2, m2, v2 = bn(ks[5], OUT_CH)
    gid, beid, mid, vid = bn(ks[8], OUT_CH)
    return dict(
        w1=conv_w(ks[0], OUT_CH, CTOT, 3, 3), cb1=conv_b(ks[1], OUT_CH, CTOT, 3, 3),
        g1=g1, be1=be1, m1=m1, v1=v1,
        w2=conv_w(ks[3], OUT_CH, OUT_CH, 3, 3), cb2=conv_b(ks[4], OUT_CH, OUT_CH, 3, 3),
        g2=g2, be2=be2, m2=m2, v2=v2,
        wid=conv_w(ks[6], OUT_CH, CTOT, 1, 1), cbid=conv_b(ks[7], OUT_CH, CTOT, 1, 1),
        gid=gid, beid=beid, mid=mid, vid=vid)


def _bilinear_up_ref(x):
    """nn.Upsample(scale_factor=2, mode='bilinear', align_corners=True)."""
    Bn, Cn, H, W = x.shape
    Ho, Wo = 2 * H, 2 * W
    ys = jnp.linspace(0.0, H - 1.0, Ho)
    xs = jnp.linspace(0.0, W - 1.0, Wo)
    y0 = jnp.floor(ys).astype(jnp.int32)
    y1 = jnp.minimum(y0 + 1, H - 1)
    wy = (ys - y0.astype(ys.dtype))[None, None, :, None]
    x0 = jnp.floor(xs).astype(jnp.int32)
    x1i = jnp.minimum(x0 + 1, W - 1)
    wx = (xs - x0.astype(xs.dtype))[None, None, None, :]
    a = x[:, :, y0, :][:, :, :, x0]
    b = x[:, :, y0, :][:, :, :, x1i]
    c = x[:, :, y1, :][:, :, :, x0]
    d = x[:, :, y1, :][:, :, :, x1i]
    top = a * (1.0 - wx) + b * wx
    bot = c * (1.0 - wx) + d * wx
    return top * (1.0 - wy) + bot * wy


def reference_up(x1, x2, p):
    """Pure-JAX replica of the PyTorch forward (eval mode) for validation."""
    up = _bilinear_up_ref(x1)
    xcat = jnp.concatenate([x2, up], axis=1)     # torch.cat([x2, x1], dim=1)

    def conv(x, w, b, pad):
        y = lax.conv_general_dilated(x, w, (1, 1), [(pad, pad), (pad, pad)],
                                     dimension_numbers=("NCHW", "OIHW", "NCHW"))
        return y + b[None, :, None, None]

    def bn(x, g, beta, mean, var):
        return ((x - mean[None, :, None, None])
                / jnp.sqrt(var[None, :, None, None] + BN_EPS)
                * g[None, :, None, None] + beta[None, :, None, None])

    h = jnp.maximum(bn(conv(xcat, p["w1"], p["cb1"], 1),
                       p["g1"], p["be1"], p["m1"], p["v1"]), 0.0)
    h = bn(conv(h, p["w2"], p["cb2"], 1), p["g2"], p["be2"], p["m2"], p["v2"])
    idt = bn(conv(xcat, p["wid"], p["cbid"], 0),
             p["gid"], p["beid"], p["mid"], p["vid"])
    return jnp.maximum(h + idt, 0.0)


if __name__ == "__main__":
    key = jax.random.PRNGKey(0)
    kx1, kx2, kp = jax.random.split(key, 3)
    x1 = jax.random.normal(kx1, (B, IN_CH1, H1, W1), jnp.float32)
    x2 = jax.random.normal(kx2, (B, IN_CH2, H2, W2), jnp.float32)
    raw = init_raw_params(kp)
    packed = pack_weights(raw)

    out = up_forward(x1, x2, packed)
    out = jax.block_until_ready(out)

    ref = reference_up(x1, x2, raw)
    assert out.shape == (B, OUT_CH, H2, W2)
    err = float(jnp.max(jnp.abs(out - ref)))
    assert jnp.allclose(out, ref, atol=1e-3, rtol=1e-3), f"max abs err {err}"
    print("KERNEL_OK")
</pallas_src>

<mosaic_0001>
module attributes {stable_mosaic.version = 11 : i64} {
  func.func @up_kernel(%arg0: memref<8x64xf32, #tpu.memory_space<vmem>>, %arg1: memref<8x256xf32, #tpu.memory_space<vmem>>, %arg2: memref<64x256xf32, #tpu.memory_space<vmem>>, %arg3: memref<9x1x256xf32, #tpu.memory_space<vmem>>, %arg4: memref<16x152xf32, #tpu.memory_space<vmem>>, %arg5: memref<16x152xf32, #tpu.memory_space<vmem>>, %arg6: memref<16x24xf32, #tpu.memory_space<vmem>>, %arg7: memref<16x256xf32, #tpu.memory_space<vmem>>) attributes {dimension_semantics = [], scalar_prefetch = 0 : i64, scratch_operands = 0 : i64, tpu.core_type = #tpu.core_type<tc>} {
    %c0 = arith.constant 0 : index
    %c0_0 = arith.constant 0 : index
    %0 = vector.load %arg0[%c0, %c0_0] : memref<8x64xf32, #tpu.memory_space<vmem>>, vector<8x64xf32>
    %c0_1 = arith.constant 0 : index
    %c0_2 = arith.constant 0 : index
    %1 = vector.load %arg2[%c0_1, %c0_2] : memref<64x256xf32, #tpu.memory_space<vmem>>, vector<64x256xf32>
    %cst = arith.constant dense<0.000000e+00> : vector<8x256xf32>
    %2 = tpu.matmul %0, %1, %cst {dimension_numbers = #tpu.dot_dimension_numbers<[1], [0], [0], [1], [0, 0, 1, 1], [], []>} : vector<8x64xf32>, vector<64x256xf32>, vector<8x256xf32> -> vector<8x256xf32>
    %c0_3 = arith.constant 0 : index
    %c0_4 = arith.constant 0 : index
    %3 = vector.load %arg1[%c0_3, %c0_4] : memref<8x256xf32, #tpu.memory_space<vmem>>, vector<8x256xf32>
    %4 = tpu.concatenate %3, %2 in 0 : vector<8x256xf32>, vector<8x256xf32> -> vector<16x256xf32>
    %c0_5 = arith.constant 0 : index
    %c0_6 = arith.constant 0 : index
    %c0_7 = arith.constant 0 : index
    %5 = vector.load %arg3[%c0_5, %c0_6, %c0_7] : memref<9x1x256xf32, #tpu.memory_space<vmem>>, vector<9x1x256xf32>
    %cst_8 = arith.constant 1.000000e+00 : f32
    %6 = vector.broadcast %cst_8 : f32 to vector<8x256xf32>
    %c0_9 = arith.constant 0 : index
    %c0_10 = arith.constant 0 : index
    %7 = vector.load %arg4[%c0_9, %c0_10] : memref<16x152xf32, #tpu.memory_space<vmem>>, vector<16x152xf32>
    %c17_i32 = arith.constant 17 : i32
    %8 = tpu.dynamic_rotate %4 by %c17_i32 dim 1 : vector<16x256xf32>, i32 -> vector<16x256xf32>
    %9 = vector.extract_strided_slice %5 {offsets = [0, 0, 0], sizes = [1, 1, 256], strides = [1, 1, 1]} : vector<9x1x256xf32> to vector<1x1x256xf32>
    %10 = vector.shape_cast %9 : vector<1x1x256xf32> to vector<1x256xf32>
    %11 = vector.broadcast %10 : vector<1x256xf32> to vector<16x256xf32>
    %12 = arith.mulf %8, %11 : vector<16x256xf32>
    %c16_i32 = arith.constant 16 : i32
    %13 = tpu.dynamic_rotate %4 by %c16_i32 dim 1 : vector<16x256xf32>, i32 -> vector<16x256xf32>
    %14 = vector.extract_strided_slice %5 {offsets = [1, 0, 0], sizes = [1, 1, 256], strides = [1, 1, 1]} : vector<9x1x256xf32> to vector<1x1x256xf32>
    %15 = vector.shape_cast %14 : vector<1x1x256xf32> to vector<1x256xf32>
    %16 = vector.broadcast %15 : vector<1x256xf32> to vector<16x256xf32>
    %17 = arith.mulf %13, %16 : vector<16x256xf32>
    %c15_i32 = arith.constant 15 : i32
    %18 = tpu.dynamic_rotate %4 by %c15_i32 dim 1 : vector<16x256xf32>, i32 -> vector<16x256xf32>
    %19 = vector.extract_strided_slice %5 {offsets = [2, 0, 0], sizes = [1, 1, 256], strides = [1, 1, 1]} : vector<9x1x256xf32> to vector<1x1x256xf32>
    %20 = vector.shape_cast %19 : vector<1x1x256xf32> to vector<1x256xf32>
    %21 = vector.broadcast %20 : vector<1x256xf32> to vector<16x256xf32>
    %22 = arith.mulf %18, %21 : vector<16x256xf32>
    %c1_i32 = arith.constant 1 : i32
    %23 = tpu.dynamic_rotate %4 by %c1_i32 dim 1 : vector<16x256xf32>, i32 -> vector<16x256xf32>
    %24 = vector.extract_strided_slice %5 {offsets = [3, 0, 0], sizes = [1, 1, 256], strides = [1, 1, 1]} : vector<9x1x256xf32> to vector<1x1x256xf32>
    %25 = vector.shape_cast %24 : vector<1x1x256xf32> to vector<1x256xf32>
    %26 = vector.broadcast %25 : vector<1x256xf32> to vector<16x256xf32>
    %27 = arith.mulf %23, %26 : vector<16x256xf32>
    %c255_i32 = arith.constant 255 : i32
    %28 = tpu.dynamic_rotate %4 by %c255_i32 dim 1 : vector<16x256xf32>, i32 -> vector<16x256xf32>
    %29 = vector.extract_strided_slice %5 {offsets = [5, 0, 0], sizes = [1, 1, 256], strides = [1, 1, 1]} : vector<9x1x256xf32> to vector<1x1x256xf32>
    %30 = vector.shape_cast %29 : vector<1x1x256xf32> to vector<1x256xf32>
    %31 = vector.broadcast %30 : vector<1x256xf32> to vector<16x256xf32>
    %32 = arith.mulf %28, %31 : vector<16x256xf32>
    %c241_i32 = arith.constant 241 : i32
    %33 = tpu.dynamic_rotate %4 by %c241_i32 dim 1 : vector<16x256xf32>, i32 -> vector<16x256xf32>
    %34 = vector.extract_strided_slice %5 {offsets = [6, 0, 0], sizes = [1, 1, 256], strides = [1, 1, 1]} : vector<9x1x256xf32> to vector<1x1x256xf32>
    %35 = vector.shape_cast %34 : vector<1x1x256xf32> to vector<1x256xf32>
    %36 = vector.broadcast %35 : vector<1x256xf32> to vector<16x256xf32>
    %37 = arith.mulf %33, %36 : vector<16x256xf32>
    %c240_i32 = arith.constant 240 : i32
    %38 = tpu.dynamic_rotate %4 by %c240_i32 dim 1 : vector<16x256xf32>, i32 -> vector<16x256xf32>
    %39 = vector.extract_strided_slice %5 {offsets = [7, 0, 0], sizes = [1, 1, 256], strides = [1, 1, 1]} : vector<9x1x256xf32> to vector<1x1x256xf32>
    %40 = vector.shape_cast %39 : vector<1x1x256xf32> to vector<1x256xf32>
    %41 = vector.broadcast %40 : vector<1x256xf32> to vector<16x256xf32>
    %42 = arith.mulf %38, %41 : vector<16x256xf32>
    %c239_i32 = arith.constant 239 : i32
    %43 = tpu.dynamic_rotate %4 by %c239_i32 dim 1 : vector<16x256xf32>, i32 -> vector<16x256xf32>
    %44 = vector.extract_strided_slice %5 {offsets = [8, 0, 0], sizes = [1, 1, 256], strides = [1, 1, 1]} : vector<9x1x256xf32> to vector<1x1x256xf32>
    %45 = vector.shape_cast %44 : vector<1x1x256xf32> to vector<1x256xf32>
    %46 = vector.broadcast %45 : vector<1x256xf32> to vector<16x256xf32>
    %47 = arith.mulf %43, %46 : vector<16x256xf32>
    %48 = tpu.concatenate %12, %17, %22, %27, %4, %32, %37, %42, %47, %6 in 0 : vector<16x256xf32>, vector<16x256xf32>, vector<16x256xf32>, vector<16x256xf32>, vector<16x256xf32>, vector<16x256xf32>, vector<16x256xf32>, vector<16x256xf32>, vector<16x256xf32>, vector<8x256xf32> -> vector<152x256xf32>
    %cst_11 = arith.constant dense<0.000000e+00> : vector<16x256xf32>
    %49 = tpu.matmul %7, %48, %cst_11 {dimension_numbers = #tpu.dot_dimension_numbers<[1], [0], [0], [1], [0, 0, 1, 1], [], []>} : vector<16x152xf32>, vector<152x256xf32>, vector<16x256xf32> -> vector<16x256xf32>
    %cst_12 = arith.constant 0.000000e+00 : f32
    %50 = vector.broadcast %cst_12 : f32 to vector<16x256xf32>
    %51 = arith.maximumf %49, %50 : vector<16x256xf32>
    %c0_13 = arith.constant 0 : index
    %c0_14 = arith.constant 0 : index
    %52 = vector.load %arg5[%c0_13, %c0_14] : memref<16x152xf32, #tpu.memory_space<vmem>>, vector<16x152xf32>
    %c17_i32_15 = arith.constant 17 : i32
    %53 = tpu.dynamic_rotate %51 by %c17_i32_15 dim 1 : vector<16x256xf32>, i32 -> vector<16x256xf32>
    %54 = vector.extract_strided_slice %5 {offsets = [0, 0, 0], sizes = [1, 1, 256], strides = [1, 1, 1]} : vector<9x1x256xf32> to vector<1x1x256xf32>
    %55 = vector.shape_cast %54 : vector<1x1x256xf32> to vector<1x256xf32>
    %56 = vector.broadcast %55 : vector<1x256xf32> to vector<16x256xf32>
    %57 = arith.mulf %53, %56 : vector<16x256xf32>
    %c16_i32_16 = arith.constant 16 : i32
    %58 = tpu.dynamic_rotate %51 by %c16_i32_16 dim 1 : vector<16x256xf32>, i32 -> vector<16x256xf32>
    %59 = vector.extract_strided_slice %5 {offsets = [1, 0, 0], sizes = [1, 1, 256], strides = [1, 1, 1]} : vector<9x1x256xf32> to vector<1x1x256xf32>
    %60 = vector.shape_cast %59 : vector<1x1x256xf32> to vector<1x256xf32>
    %61 = vector.broadcast %60 : vector<1x256xf32> to vector<16x256xf32>
    %62 = arith.mulf %58, %61 : vector<16x256xf32>
    %c15_i32_17 = arith.constant 15 : i32
    %63 = tpu.dynamic_rotate %51 by %c15_i32_17 dim 1 : vector<16x256xf32>, i32 -> vector<16x256xf32>
    %64 = vector.extract_strided_slice %5 {offsets = [2, 0, 0], sizes = [1, 1, 256], strides = [1, 1, 1]} : vector<9x1x256xf32> to vector<1x1x256xf32>
    %65 = vector.shape_cast %64 : vector<1x1x256xf32> to vector<1x256xf32>
    %66 = vector.broadcast %65 : vector<1x256xf32> to vector<16x256xf32>
    %67 = arith.mulf %63, %66 : vector<16x256xf32>
    %c1_i32_18 = arith.constant 1 : i32
    %68 = tpu.dynamic_rotate %51 by %c1_i32_18 dim 1 : vector<16x256xf32>, i32 -> vector<16x256xf32>
    %69 = vector.extract_strided_slice %5 {offsets = [3, 0, 0], sizes = [1, 1, 256], strides = [1, 1, 1]} : vector<9x1x256xf32> to vector<1x1x256xf32>
    %70 = vector.shape_cast %69 : vector<1x1x256xf32> to vector<1x256xf32>
    %71 = vector.broadcast %70 : vector<1x256xf32> to vector<16x256xf32>
    %72 = arith.mulf %68, %71 : vector<16x256xf32>
    %c255_i32_19 = arith.constant 255 : i32
    %73 = tpu.dynamic_rotate %51 by %c255_i32_19 dim 1 : vector<16x256xf32>, i32 -> vector<16x256xf32>
    %74 = vector.extract_strided_slice %5 {offsets = [5, 0, 0], sizes = [1, 1, 256], strides = [1, 1, 1]} : vector<9x1x256xf32> to vector<1x1x256xf32>
    %75 = vector.shape_cast %74 : vector<1x1x256xf32> to vector<1x256xf32>
    %76 = vector.broadcast %75 : vector<1x256xf32> to vector<16x256xf32>
    %77 = arith.mulf %73, %76 : vector<16x256xf32>
    %c241_i32_20 = arith.constant 241 : i32
    %78 = tpu.dynamic_rotate %51 by %c241_i32_20 dim 1 : vector<16x256xf32>, i32 -> vector<16x256xf32>
    %79 = vector.extract_strided_slice %5 {offsets = [6, 0, 0], sizes = [1, 1, 256], strides = [1, 1, 1]} : vector<9x1x256xf32> to vector<1x1x256xf32>
    %80 = vector.shape_cast %79 : vector<1x1x256xf32> to vector<1x256xf32>
    %81 = vector.broadcast %80 : vector<1x256xf32> to vector<16x256xf32>
    %82 = arith.mulf %78, %81 : vector<16x256xf32>
    %c240_i32_21 = arith.constant 240 : i32
    %83 = tpu.dynamic_rotate %51 by %c240_i32_21 dim 1 : vector<16x256xf32>, i32 -> vector<16x256xf32>
    %84 = vector.extract_strided_slice %5 {offsets = [7, 0, 0], sizes = [1, 1, 256], strides = [1, 1, 1]} : vector<9x1x256xf32> to vector<1x1x256xf32>
    %85 = vector.shape_cast %84 : vector<1x1x256xf32> to vector<1x256xf32>
    %86 = vector.broadcast %85 : vector<1x256xf32> to vector<16x256xf32>
    %87 = arith.mulf %83, %86 : vector<16x256xf32>
    %c239_i32_22 = arith.constant 239 : i32
    %88 = tpu.dynamic_rotate %51 by %c239_i32_22 dim 1 : vector<16x256xf32>, i32 -> vector<16x256xf32>
    %89 = vector.extract_strided_slice %5 {offsets = [8, 0, 0], sizes = [1, 1, 256], strides = [1, 1, 1]} : vector<9x1x256xf32> to vector<1x1x256xf32>
    %90 = vector.shape_cast %89 : vector<1x1x256xf32> to vector<1x256xf32>
    %91 = vector.broadcast %90 : vector<1x256xf32> to vector<16x256xf32>
    %92 = arith.mulf %88, %91 : vector<16x256xf32>
    %93 = tpu.concatenate %57, %62, %67, %72, %51, %77, %82, %87, %92, %6 in 0 : vector<16x256xf32>, vector<16x256xf32>, vector<16x256xf32>, vector<16x256xf32>, vector<16x256xf32>, vector<16x256xf32>, vector<16x256xf32>, vector<16x256xf32>, vector<16x256xf32>, vector<8x256xf32> -> vector<152x256xf32>
    %cst_23 = arith.constant dense<0.000000e+00> : vector<16x256xf32>
    %94 = tpu.matmul %52, %93, %cst_23 {dimension_numbers = #tpu.dot_dimension_numbers<[1], [0], [0], [1], [0, 0, 1, 1], [], []>} : vector<16x152xf32>, vector<152x256xf32>, vector<16x256xf32> -> vector<16x256xf32>
    %c0_24 = arith.constant 0 : index
    %c0_25 = arith.constant 0 : index
    %95 = vector.load %arg6[%c0_24, %c0_25] : memref<16x24xf32, #tpu.memory_space<vmem>>, vector<16x24xf32>
    %96 = tpu.concatenate %4, %6 in 0 : vector<16x256xf32>, vector<8x256xf32> -> vector<24x256xf32>
    %cst_26 = arith.constant dense<0.000000e+00> : vector<16x256xf32>
    %97 = tpu.matmul %95, %96, %cst_26 {dimension_numbers = #tpu.dot_dimension_numbers<[1], [0], [0], [1], [0, 0, 1, 1], [], []>} : vector<16x24xf32>, vector<24x256xf32>, vector<16x256xf32> -> vector<16x256xf32>
    %98 = arith.addf %94, %97 : vector<16x256xf32>
    %cst_27 = arith.constant 0.000000e+00 : f32
    %99 = vector.broadcast %cst_27 : f32 to vector<16x256xf32>
    %100 = arith.maximumf %98, %99 : vector<16x256xf32>
    %c0_28 = arith.constant 0 : index
    %c0_29 = arith.constant 0 : index
    %101 = vector.load %arg7[%c0_28, %c0_29] : memref<16x256xf32, #tpu.memory_space<vmem>>, vector<16x256xf32>
    tpu.vector_store %arg7[%c0_28, %c0_29], %100 {strides = array<i32>} : memref<16x256xf32, #tpu.memory_space<vmem>>, vector<16x256xf32>,
    return
  }
}

</mosaic_0001>

<bundles_post_ra>
// kernel: tpu_custom_call.1
= control target key start
LH: loop header
LB: loop body
LE: loop exit
PB: predicated region body
PF: predicated region fallthrough
CT: control target
= control target key end

     0   :  { %12 = vsyncpa [#allocation3], 0  ;;  %s1638_s0 = inlined_call_operand.hbm [shape: f32[8,64], index: 0, kind: input, shape index: {}]   ;;  %s1639_s1 = inlined_call_operand.hbm [shape: f32[8,256], index: 1, kind: input, shape index: {}]   ;;  %s1640_s2 = inlined_call_operand.hbm [shape: f32[64,256], index: 2, kind: input, shape index: {}]   ;;  %s1641_s3 = inlined_call_operand.hbm [shape: f32[9,1,256], index: 3, kind: input, shape index: {}]   ;;  %s1642_s4 = inlined_call_operand.hbm [shape: f32[16,152], index: 4, kind: input, shape index: {}]   ;;  %s1643_s5 = inlined_call_operand.hbm [shape: f32[16,152], index: 5, kind: input, shape index: {}]   ;;  %s1644_s6 = inlined_call_operand.hbm [shape: f32[16,24], index: 6, kind: input, shape index: {}]   ;;  %s1645_s7 = inlined_call_operand.hbm [shape: f32[16,256], index: 7, kind: output, shape index: {}]  }
   0x1   :  { %13 = vsyncpa [#allocation6], 0 }
   0x2   :  { %14 = vsyncpa [#allocation9], 0 }
   0x3   :  { %15 = vsyncpa [#allocation12], 0  ;;  %s33_s26 = sshll.u32 %s1639_s1, 4  ;;  %s34_s26 = int_to_ptr.hbm [resolvable:$true] %s33_s26 }
   0x4   :  { %16 = vsyncpa [#allocation4], 0  ;;  %s1040_s27 = smov [#allocation5]   ;;  %s56_s8 = sshll.u32 %s1641_s3, 4  ;;  %s57_s8 = int_to_ptr.hbm [resolvable:$true] %s56_s8 }
   0x5   :  { %s35_s28 = sshll.u32 %s1040_s27, 4  ;;  %s1041_s9 = smov [#allocation8]   ;;  %s36_s28 = int_to_ptr.vmem [resolvable:$true] %s35_s28 }
   0x6   :  { %38 = dma.hbm_to_vmem [thread:$0]  %s34_s26, 256, %s36_s28, [#allocation6]  }
   0x7   :  { %s58_s10 = sshll.u32 %s1041_s9, 4  ;;  %s1042_s11 = smov 32   ;;  %s59_s10 = int_to_ptr.vmem [resolvable:$true] %s58_s10 }
   0x8   :  { %s1043_s12 = smov 2   ;;  %s82_s1 = sshll.u32 %s1643_s5, 4  ;;  %s83_s1 = int_to_ptr.hbm [resolvable:$true] %s82_s1 }
   0x9   :  { %64 = dma.hbm_to_vmem [thread:$0]  %s57_s8, 288, %s59_s10, [#allocation9], %s1042_s11, %s1042_s11, %s1043_s12  }
   0xa   :  { %s1044_s15 = smov [#allocation11]   ;;  %s22_s3 = sshll.u32 %s1638_s0, 4  ;;  %s23_s3 = int_to_ptr.hbm [resolvable:$true] %s22_s3 }
   0xb   :  { %s84_s16 = sshll.u32 %s1044_s15, 4  ;;  %s1045_s19 = smov 256   ;;  %s85_s16 = int_to_ptr.vmem [resolvable:$true] %s84_s16 }
   0xc   :  { %s1046_s20 = smov 16   ;;  %s1047_s21 = smov [#allocation2]  }
   0xd   :  { %90 = dma.hbm_to_vmem [thread:$0]  %s83_s1, 512, %s85_s16, [#allocation12], %s1045_s19, %s1045_s19, %s1046_s20  }
   0xe   :  { %s24_s22 = sshll.u32 %s1047_s21, 4  ;;  %s43_s5 = sshll.u32 %s1640_s2, 4  ;;  %s25_s22 = int_to_ptr.vmem [resolvable:$true] %s24_s22  ;;  %s44_s5 = int_to_ptr.hbm [resolvable:$true] %s43_s5 }
   0xf   :  { %27 = dma.hbm_to_vmem [thread:$0]  %s23_s3, 128, %s25_s22, [#allocation3]  }
  0x10   :  { %s69_s0 = sshll.u32 %s1642_s4, 4  ;;  %s1048_s27 = smov [#allocation7]   ;;  %s70_s0 = int_to_ptr.hbm [resolvable:$true] %s69_s0 }
  0x11   :  { %s45_s28 = sshll.u32 %s1048_s27, 4  ;;  %s1049_s29 = smov [#allocation10]   ;;  %s46_s28 = int_to_ptr.vmem [resolvable:$true] %s45_s28 }
  0x12   :  { %51 = dma.hbm_to_vmem [thread:$0]  %s44_s5, 2048, %s46_s28, [#allocation6], %s1045_s19, %s1045_s19, %s1046_s20  }
  0x13   :  { %s71_s30 = sshll.u32 %s1049_s29, 4  ;;  %s95_s2 = sshll.u32 %s1644_s6, 4  ;;  %s72_s30 = int_to_ptr.vmem [resolvable:$true] %s71_s30  ;;  %s96_s2 = int_to_ptr.hbm [resolvable:$true] %s95_s2 }
  0x14   :  { %77 = dma.hbm_to_vmem [thread:$0]  %s70_s0, 512, %s72_s30, [#allocation9], %s1045_s19, %s1045_s19, %s1046_s20  }
  0x15   :  { %s1050_s4 = smov [#allocation13]   ;;  %s1051_s11 = smov 128  }
  0x16   :  { %s97_s10 = sshll.u32 %s1050_s4, 4  ;;  %s1052_s12 = smov 8   ;;  %s98_s10 = int_to_ptr.vmem [resolvable:$true] %s97_s10 }
  0x17   :  { %103 = dma.hbm_to_vmem [thread:$0]  %s96_s2, 256, %s98_s10, [#allocation12], %s1051_s11, %s1051_s11, %s1052_s12  }
  0x18   :  { %1030 = dma.done.wait [#allocation3], 128  }
  0x19   :  { %1031 = vsyncadd [#allocation3], 4294967168 }
  0x1a   :  { %1032 = dma.done.wait [#allocation6], 2304  }
  0x1b   :  { %1033 = vsyncadd [#allocation6], 4294964992 }
  0x1c   :  { %1034 = dma.done.wait [#allocation9], 800  }
  0x1d   :  { %1035 = vsyncadd [#allocation9], 4294966496 }
  0x1e   :  { %1036 = dma.done.wait [#allocation12], 768  }
  0x1f   :  { %1037 = vsyncadd [#allocation12], 4294966528  ;;  %v147_v0 = vld [vmem:[#allocation7 + $0x70] sm:$0xff]  ;;  %v148_v1 = vld [vmem:[#allocation7 + $0x78] sm:$0xff]  ;;  %s1053_s6 = smov 112   ;;  %s1054_s13 = smov 113   ;;  %v215_v37 = vlaneseq }
  0x20   :  { %v145_v2 = vld [vmem:[#allocation7 + $0x60] sm:$0xff]  ;;  %161 = vmatpush.msra.mxu0 %v147_v0  ;;  %181 = vmatpush.msra.mxu1 %v148_v1  ;;  %v146_v3 = vld [vmem:[#allocation7 + $0x68] sm:$0xff]  ;;  %v143_v4 = vld [vmem:[#allocation7 + $0x50] sm:$0xff]  ;;  %s1055_s14 = smov 127   ;;  %vm149_vm0 = vcmask 523264   ;;  %s1056_s1 = smov 1  }
  0x21   :  { %v144_v5 = vld [vmem:[#allocation7 + $0x58] sm:$0xff]  ;;  %v141_v6 = vld [vmem:[#allocation7 + $0x40] sm:$0xff]  ;;  %v142_v7 = vld [vmem:[#allocation7 + $0x48] sm:$0xff]  ;;  %v1057_v19 = vmov 1.0   ;;  %s1058_s15 = smov 15   ;;  %s1059_s16 = smov 17  }
  0x22   :  { %162 = vmatpush.msra.mxu0 %v145_v2  ;;  %182 = vmatpush.msra.mxu1 %v146_v3  ;;  %v1132_v8 = vld [vmem:[#allocation5] sm:$0xff]  ;;  %v140_v10 = vld [vmem:[#allocation7 + $0x38] sm:$0xff]  ;;  %v137_v12 = vld [vmem:[#allocation7 + $0x20] sm:$0xff]  ;;  %s1060_s17 = smov 111   ;;  %v1224_v41 = vand.u32 127, %v215_v37  ;;  %vm385_vm9 = vcmask 195584  }
  0x23   :  { %v139_v9 = vld [vmem:[#allocation7 + $0x30] sm:$0xff]  ;;  %341 = vrot.lane.b32.xlu1 %v1132_v8, %s1053_s6  ;;  %319 = vrot.lane.b32.xlu0 %v1132_v8, %s1054_s13  ;;  %v1138_v11 = vld [vmem:[#allocation5 + $0x8] sm:$0xff]  ;;  %v138_v13 = vld [vmem:[#allocation7 + $0x28] sm:$0xff]  ;;  %s1061_s18 = smov [#allocation14]   ;;  %s786_s23 = sshll.u32 %s1645_s7, 4  ;;  %s787_s23 = int_to_ptr.hbm [resolvable:$true] %s786_s23 }
  0x24   :  { %163 = vmatpush.msra.mxu0 %v143_v4  ;;  %183 = vmatpush.msra.mxu1 %v144_v5  ;;  %v135_v14 = vld [vmem:[#allocation7 + $0x10] sm:$0xff]  ;;  %v136_v15 = vld [vmem:[#allocation7 + $0x18] sm:$0xff]  ;;  %v133_v16 = vld [vmem:[#allocation7] sm:$0xff]  ;;  %vm349_vm1 = vcmp.lt.s32.totalorder %v1224_v41, 112  ;;  %vm327_vm2 = vcmp.lt.s32.totalorder %v1224_v41, 113  ;;  %vm305_vm3 = vcmp.lt.s32.totalorder %v1224_v41, 127 }
  0x25   :  { %301 = vrot.lane.b32.xlu2 %v1138_v11, %s1055_s14  ;;  %v134_v17 = vld [vmem:[#allocation7 + $0x8] sm:$0xff]  ;;  %vm283_vm4 = vcmp.lt.s32.totalorder %v1224_v41, 1  ;;  %vm371_vm5 = vcmp.lt.s32.totalorder %v1224_v41, 111  ;;  %vm261_vm6 = vcmp.lt.s32.totalorder %v1224_v41, 15  ;;  %vm239_vm7 = vcmp.lt.s32.totalorder %v1224_v41, 16  ;;  %s784_s3 = sshll.u32 %s1061_s18, 4  ;;  %s785_s3 = int_to_ptr.vmem [resolvable:$true] %s784_s3 }
  0x26   :  { %164 = vmatpush.msra.mxu0 %v141_v6  ;;  %184 = vmatpush.msra.mxu1 %v142_v7  ;;  %v132_v18 = vld [vmem:[#allocation2] sm:$0xff]  ;;  %vm217_vm8 = vcmp.lt.s32.totalorder %v1224_v41, 17 }
  0x27   :  { %v201_v42 = vld [vmem:[#allocation8 + $0xe] sm:$0x3]  ;;  %v200_v52 = vld [vmem:[#allocation8 + $0xc] sm:$0x3]  ;;  %v199_v63 = vld [vmem:[#allocation8 + $0xa] sm:$0x3] }
  0x28   :  { %165 = vmatpush.msra.mxu0 %v139_v9  ;;  %185 = vmatpush.msra.mxu1 %v140_v10  ;;  %v1231_v46 = vperm.slane %v201_v42, 0  ;;  %v1233_v47 = vperm.slane %v201_v42, 1  ;;  %v1252_v59 = vperm.slane %v200_v52, 0  ;;  %v1254_v60 = vperm.slane %v200_v52, 1 }
  0x29   :  { %v1269_v7 = vperm.slane %v199_v63, 0  ;;  %v1271_v9 = vperm.slane %v199_v63, 1 }
  0x2a   :  { %166 = vmatpush.msra.mxu0 %v137_v12  ;;  %186 = vmatpush.msra.mxu1 %v138_v13 }
  0x2b   :  { %345 = vrot.lane.b32.xlu1 %v1138_v11, %s1053_s6  ;;  %279 = vrot.lane.b32.xlu0 %v1138_v11, %s1056_s1 }
  0x2c   :  { %167 = vmatpush.msra.mxu0 %v135_v14  ;;  %187 = vmatpush.msra.mxu1 %v136_v15 }
  0x2d   :  { %275 = vrot.lane.b32.xlu2 %v1132_v8, %s1056_s1 }
  0x2e   :  { %168 = vmatpush.msra.mxu0 %v133_v16  ;;  %188 = vmatpush.msra.mxu1 %v134_v17  ;;  %v1283_v17 = vld [vmem:[#allocation8 + $0x10] sm:$0x3] }
  0x2f   :  { %802 = vmatmul.msk.f32.vlgmr.msra.gmra.mxu0 %vm149_vm0, %v132_v18  ;;  %803 = vmatmul.msk.f32.vlgmr.msra.gmra.mxu1 %vm149_vm0, %v132_v18 }
  0x30   :  { %641 = vmatpush.msrb.mxu1 %v1057_v19  ;;  %474 = vmatpush.msrb.mxu0 %v1057_v19 }
  0x33   :  { %323 = vrot.lane.b32.xlu1 %v1138_v11, %s1054_s13  ;;  %253 = vrot.lane.b32.xlu0 %v1132_v8, %s1058_s15 }
  0x35   :  { %235 = vrot.lane.b32.xlu2 %v1138_v11, %s1046_s20 }
  0x3b   :  { %297 = vrot.lane.b32.xlu1 %v1132_v8, %s1055_s14 }
  0x43   :  { %257 = vrot.lane.b32.xlu1 %v1138_v11, %s1058_s15 }
  0x4b   :  { %231 = vrot.lane.b32.xlu1 %v1132_v8, %s1046_s20 }
  0x7f   :  { %v302_v23 = vpop.permute.xlu2 %301 }
  0x87   :  { %v1208_v25 = vpop.permute.xlu2 %275 }
  0x8f   :  { %v1210_v27 = vpop.permute.xlu2 %235 }
  0x95   :  { %v342_v22 = vpop.permute.xlu1 %341  ;;  %v320_v29 = vpop.permute.xlu0 %319 }
  0x9d   :  { %v346_v24 = vpop.permute.xlu1 %345  ;;  %v1214_v32 = vpop.permute.xlu0 %279 }
  0x9e   :  { %v350_v48 = vsel %vm349_vm1, %v342_v22, %v346_v24  ;;  %v352_v49 = vsel %vm349_vm1, %v346_v24, %v342_v22  ;;  %v1290_v24 = vperm.slane %v1283_v17, 1 }
  0x9f   :  { %v359_v57 = vmul.f32 %v1231_v46, %v350_v48  ;;  %v360_v58 = vmul.f32 %v1233_v47, %v352_v49  ;;  %v197_v48 = vld [vmem:[#allocation8 + $0x4] sm:$0x3] }
  0xa0   :  { %v1338_v52 = vperm.slane %v197_v48, 1 }
  0xa5   :  { %v324_v26 = vpop.permute.xlu1 %323  ;;  %v1218_v35 = vpop.permute.xlu0 %253 }
  0xa6   :  { %v328_v61 = vsel %vm327_vm2, %v320_v29, %v324_v26  ;;  %v330_v62 = vsel %vm327_vm2, %v324_v26, %v320_v29  ;;  %v284_v29 = vsel %vm283_vm4, %v1208_v25, %v1214_v32 }
  0xa7   :  { %v337_v5 = vmul.f32 %v1252_v59, %v328_v61  ;;  %v338_v6 = vmul.f32 %v1254_v60, %v330_v62 }
  0xac   :  { %v1162_v20 = vpop.f32.mrf.mxu0  ;;  %v1164_v21 = vpop.f32.mrf.mxu1 }
  0xad   :  { %281 = vrot.lane.b32.xlu1 %v1164_v21, %s1056_s1  ;;  %321 = vrot.lane.b32.xlu2 %v1162_v20, %s1054_s13  ;;  %v298_v28 = vpop.permute.xlu1 %297 }
  0xae   :  { %343 = vrot.lane.b32.xlu0 %v1162_v20, %s1053_s6  ;;  %642 = vmatpush.msrb.mxu1 %v1162_v20  ;;  %v306_v10 = vsel %vm305_vm3, %v298_v28, %v302_v23  ;;  %v308_v12 = vsel %vm305_vm3, %v302_v23, %v298_v28  ;;  %v198_v23 = vld [vmem:[#allocation8 + $0x6] sm:$0x3] }
  0xaf   :  { %v315_v18 = vmul.f32 %v1269_v7, %v306_v10  ;;  %v316_v22 = vmul.f32 %v1271_v9, %v308_v12  ;;  %v1308_v37 = vperm.slane %v198_v23, 1 }
  0xb0   :  { %643 = vmatpush.msrb.mxu1 %v1132_v8 }
  0xb5   :  { %255 = vrot.lane.b32.xlu1 %v1162_v20, %s1058_s15  ;;  %325 = vrot.lane.b32.xlu2 %v1164_v21, %s1054_s13  ;;  %v1212_v31 = vpop.permute.xlu1 %257 }
  0xb6   :  { %347 = vrot.lane.b32.xlu0 %v1164_v21, %s1053_s6 }
  0xbd   :  { %213 = vrot.lane.b32.xlu1 %v1164_v21, %s1059_s16  ;;  %299 = vrot.lane.b32.xlu2 %v1162_v20, %s1055_s14  ;;  %v1216_v34 = vpop.permute.xlu1 %231 }
  0xbe   :  { %303 = vrot.lane.b32.xlu0 %v1164_v21, %s1055_s14 }
  0xc5   :  { %365 = vrot.lane.b32.xlu1 %v1162_v20, %s1060_s17  ;;  %259 = vrot.lane.b32.xlu2 %v1164_v21, %s1058_s15 }
  0xc6   :  { %277 = vrot.lane.b32.xlu0 %v1162_v20, %s1056_s1 }
  0xcd   :  { %233 = vrot.lane.b32.xlu2 %v1162_v20, %s1046_s20  ;;  %367 = vrot.lane.b32.xlu1 %v1138_v11, %s1060_s17 }
  0xce   :  { %237 = vrot.lane.b32.xlu0 %v1164_v21, %s1046_s20 }
  0xd5   :  { %207 = vrot.lane.b32.xlu2 %v1132_v8, %s1059_s16 }
  0xd6   :  { %209 = vrot.lane.b32.xlu0 %v1162_v20, %s1059_s16 }
  0xdd   :  { %369 = vrot.lane.b32.xlu2 %v1164_v21, %s1060_s17 }
  0xde   :  { %211 = vrot.lane.b32.xlu0 %v1138_v11, %s1059_s16 }
  0xe6   :  { %363 = vrot.lane.b32.xlu0 %v1132_v8, %s1060_s17 }
 0x107   :  { %v322_v30 = vpop.permute.xlu2 %321 }
 0x10f   :  { %v326_v33 = vpop.permute.xlu2 %325 }
 0x110   :  { %v329_v55 = vsel %vm327_vm2, %v322_v30, %v326_v33  ;;  %v331_v56 = vsel %vm327_vm2, %v326_v33, %v322_v30 }
 0x111   :  { %v339_v0 = vmul.f32 %v1252_v59, %v329_v55  ;;  %v340_v1 = vmul.f32 %v1254_v60, %v331_v56 }
 0x117   :  { %v300_v36 = vpop.permute.xlu2 %299 }
 0x11f   :  { %v1220_v38 = vpop.permute.xlu1 %281  ;;  %v1222_v39 = vpop.permute.xlu2 %259 }
 0x120   :  { %v344_v40 = vpop.permute.xlu0 %343 }
 0x127   :  { %v1227_v43 = vpop.permute.xlu1 %255  ;;  %v1229_v44 = vpop.permute.xlu2 %233 }
 0x128   :  { %v348_v45 = vpop.permute.xlu0 %347 }
 0x129   :  { %v351_v50 = vsel %vm349_vm1, %v344_v40, %v348_v45  ;;  %v353_v51 = vsel %vm349_vm1, %v348_v45, %v344_v40  ;;  %v286_v40 = vsel %vm283_vm4, %v1214_v32, %v1208_v25  ;;  %v263_v32 = vsel %vm261_vm6, %v1227_v43, %v1222_v39 }
 0x12a   :  { %v361_v53 = vmul.f32 %v1231_v46, %v351_v50  ;;  %v362_v54 = vmul.f32 %v1233_v47, %v353_v51  ;;  %v294_v50 = vmul.f32 %v1308_v37, %v284_v29  ;;  %v1336_v51 = vperm.slane %v197_v48, 0  ;;  %v205_v48 = vld [vmem:[#allocation10 + $0x10] sm:$0xff] }
 0x12b   :  { %v274_v55 = vmul.f32 %v1338_v52, %v263_v32 }
 0x12c   :  { %392 = vmatpush.msra.mxu2 %v361_v53  ;;  %438 = vmatpush.msra.mxu3 %v362_v54  ;;  %v262_v53 = vsel %vm261_vm6, %v1218_v35, %v1212_v31 }
 0x12e   :  { %393 = vmatpush.msra.mxu2 %v359_v57  ;;  %439 = vmatpush.msra.mxu3 %v360_v58  ;;  %v272_v58 = vmul.f32 %v1338_v52, %v262_v53 }
 0x12f   :  { %v1263_v2 = vpop.permute.xlu1 %213  ;;  %v1265_v3 = vpop.permute.xlu2 %207 }
 0x130   :  { %394 = vmatpush.msra.mxu2 %v339_v0  ;;  %440 = vmatpush.msra.mxu3 %v340_v1  ;;  %v304_v4 = vpop.permute.xlu0 %303 }
 0x131   :  { %v307_v13 = vsel %vm305_vm3, %v300_v36, %v304_v4  ;;  %v309_v14 = vsel %vm305_vm3, %v304_v4, %v300_v36  ;;  %v1306_v36 = vperm.slane %v198_v23, 0  ;;  %v1395_v23 = vperm.slane %v1283_v17, 0 }
 0x132   :  { %395 = vmatpush.msra.mxu2 %v337_v5  ;;  %441 = vmatpush.msra.mxu3 %v338_v6  ;;  %v317_v15 = vmul.f32 %v1269_v7, %v307_v13  ;;  %v318_v16 = vmul.f32 %v1271_v9, %v309_v14  ;;  %v195_v5 = vld [vmem:[#allocation8] sm:$0x3] }
 0x134   :  { %396 = vmatpush.msra.mxu2 %v317_v15  ;;  %442 = vmatpush.msra.mxu3 %v318_v16 }
 0x136   :  { %397 = vmatpush.msra.mxu2 %v315_v18  ;;  %443 = vmatpush.msra.mxu3 %v316_v22 }
 0x137   :  { %v1292_v26 = vpop.permute.xlu1 %365  ;;  %v1294_v28 = vpop.permute.xlu2 %369 }
 0x138   :  { %v375_v30 = vsel %vm371_vm5, %v1294_v28, %v1292_v26  ;;  %398 = vmatpush.msra.mxu2 %v1162_v20  ;;  %444 = vmatpush.msra.mxu3 %v1164_v21  ;;  %v278_v33 = vpop.permute.xlu0 %277 }
 0x139   :  { %v285_v42 = vsel %vm283_vm4, %v278_v33, %v1220_v38  ;;  %v287_v20 = vsel %vm283_vm4, %v1220_v38, %v278_v33  ;;  %v384_v45 = vmul.f32 %v1290_v24, %v375_v30  ;;  %v265_v38 = vsel %vm261_vm6, %v1222_v39, %v1227_v43  ;;  %v196_v43 = vld [vmem:[#allocation8 + $0x2] sm:$0x3]  ;;  %v203_v33 = vld [vmem:[#allocation10] sm:$0xff] }
 0x13a   :  { %399 = vmatpush.msra.mxu2 %v1132_v8  ;;  %445 = vmatpush.msra.mxu3 %v1138_v11  ;;  %v295_v49 = vmul.f32 %v1306_v36, %v287_v20  ;;  %v296_v25 = vmul.f32 %v1308_v37, %v285_v42  ;;  %v293_v8 = vmul.f32 %v1306_v36, %v286_v40  ;;  %v1353_v61 = vperm.slane %v196_v43, 0 }
 0x13b   :  { %475 = vmatpush.msrb.mxu0 %v384_v45  ;;  %v264_v39 = vsel %vm261_vm6, %v1212_v31, %v1218_v35  ;;  %v273_v54 = vmul.f32 %v1336_v51, %v265_v38  ;;  %v1355_v62 = vperm.slane %v196_v43, 1  ;;  %v240_v31 = vsel %vm239_vm7, %v1216_v34, %v1210_v27  ;;  %v204_v45 = vld [vmem:[#allocation10 + $0x8] sm:$0xff] }
 0x13c   :  { %400 = vmatpush.msra.mxu2 %v295_v49  ;;  %446 = vmatpush.msra.mxu3 %v296_v25  ;;  %v271_v57 = vmul.f32 %v1336_v51, %v264_v39  ;;  %v242_v35 = vsel %vm239_vm7, %v1210_v27, %v1216_v34  ;;  %v1376_v34 = vperm.slane %v195_v5, 0  ;;  %v206_v49 = vld [vmem:[#allocation10 + $0x18] sm:$0xff] }
 0x13d   :  { %v249_v6 = vmul.f32 %v1353_v61, %v242_v35  ;;  %v250_v27 = vmul.f32 %v1355_v62, %v240_v31 }
 0x13e   :  { %401 = vmatpush.msra.mxu2 %v293_v8  ;;  %447 = vmatpush.msra.mxu3 %v294_v50 }
 0x140   :  { %402 = vmatpush.msra.mxu2 %v273_v54  ;;  %448 = vmatpush.msra.mxu3 %v274_v55  ;;  %v238_v56 = vpop.permute.xlu0 %237 }
 0x141   :  { %v241_v63 = vsel %vm239_vm7, %v1229_v44, %v238_v56  ;;  %v243_v0 = vsel %vm239_vm7, %v238_v56, %v1229_v44  ;;  %v1378_v44 = vperm.slane %v195_v5, 1 }
 0x142   :  { %403 = vmatpush.msra.mxu2 %v271_v57  ;;  %449 = vmatpush.msra.mxu3 %v272_v58  ;;  %v251_v1 = vmul.f32 %v1353_v61, %v243_v0  ;;  %v252_v4 = vmul.f32 %v1355_v62, %v241_v63 }
 0x144   :  { %404 = vmatpush.msra.mxu2 %v251_v1  ;;  %450 = vmatpush.msra.mxu3 %v252_v4 }
 0x146   :  { %405 = vmatpush.msra.mxu2 %v249_v6  ;;  %451 = vmatpush.msra.mxu3 %v250_v27 }
 0x148   :  { %v210_v10 = vpop.permute.xlu0 %209 }
 0x149   :  { %v219_v12 = vsel %vm217_vm8, %v210_v10, %v1263_v2  ;;  %v221_v13 = vsel %vm217_vm8, %v1263_v2, %v210_v10  ;;  %v373_v2 = vsel %vm371_vm5, %v1292_v26, %v1294_v28 }
 0x14a   :  { %v229_v14 = vmul.f32 %v1376_v34, %v221_v13  ;;  %v230_v15 = vmul.f32 %v1378_v44, %v219_v12  ;;  %v383_v40 = vmul.f32 %v1395_v23, %v373_v2 }
 0x14c   :  { %406 = vmatpush.msra.mxu2 %v229_v14  ;;  %452 = vmatpush.msra.mxu3 %v230_v15 }
 0x150   :  { %v212_v16 = vpop.permute.xlu0 %211 }
 0x151   :  { %v218_v18 = vsel %vm217_vm8, %v1265_v3, %v212_v16  ;;  %v220_v22 = vsel %vm217_vm8, %v212_v16, %v1265_v3  ;;  %v368_v3 = vpop.permute.xlu1 %367 }
 0x152   :  { %v227_v29 = vmul.f32 %v1376_v34, %v220_v22  ;;  %v228_v30 = vmul.f32 %v1378_v44, %v218_v18 }
 0x154   :  { %407 = vmatpush.msra.mxu2 %v227_v29  ;;  %453 = vmatpush.msra.mxu3 %v228_v30  ;;  %v620_v30 = vld [vmem:[#allocation13] sm:$0xff] }
 0x155   :  { %454 = vmatmul.f32.vlgmr.msra.gmra.mxu3 %v203_v33  ;;  %408 = vmatmul.f32.vlgmr.msra.gmra.mxu2 %v203_v33 }
 0x156   :  { %428 = vmatpush.msrb.mxu2 %v1057_v19  ;;  %808 = vmatmul.msk.f32.vlgmr.msrb.gmra.mxu1 %vm385_vm9, %v620_v30 }
 0x158   :  { %429 = vmatpush.msrb.mxu2 %v383_v40  ;;  %v364_v17 = vpop.permute.xlu0 %363 }
 0x159   :  { %v372_v42 = vsel %vm371_vm5, %v364_v17, %v368_v3  ;;  %v374_v26 = vsel %vm371_vm5, %v368_v3, %v364_v17 }
 0x15a   :  { %v381_v28 = vmul.f32 %v1395_v23, %v372_v42  ;;  %v382_v20 = vmul.f32 %v1290_v24, %v374_v26 }
 0x15c   :  { %430 = vmatpush.msrb.mxu2 %v381_v28  ;;  %476 = vmatpush.msrb.mxu0 %v382_v20  ;;  %v621_v28 = vld [vmem:[#allocation13 + $0x8] sm:$0xff] }
 0x15d   :  { %806 = vmatmul.msk.f32.vlgmr.msrb.gmra.mxu0 %vm385_vm9, %v204_v45  ;;  %457 = vmatmul.f32.gmra.mxu3 %v205_v48 }
 0x15e   :  { %664 = vmatpush.msra.mxu0 %v1057_v19  ;;  %411 = vmatmul.f32.gmra.mxu2 %v205_v48 }
 0x15f   :  { %716 = vmatpush.msra.mxu2 %v1057_v19  ;;  %809 = vmatmul.msk.f32.gmra.mxu1 %vm385_vm9, %v621_v28 }
 0x160   :  { %665 = vmatpush.msra.mxu0 %v1164_v21 }
 0x162   :  { %666 = vmatpush.msra.mxu0 %v1138_v11 }
 0x164   :  { %762 = vmatpush.msrb.mxu0 %v1057_v19 }
 0x165   :  { %807 = vmatmul.msk.f32.gmra.mxu0 %vm385_vm9, %v206_v49 }
 0x166   :  { %804 = vmatmul.msk.f32.vlgmr.msrb.gmra.mxu2 %vm385_vm9, %v204_v45 }
 0x16d   :  { %810 = vmatmul.msk.f32.vlgmr.msra.gmra.mxu0 %vm385_vm9, %v620_v30 }
 0x16e   :  { %805 = vmatmul.msk.f32.gmra.mxu2 %vm385_vm9, %v206_v49 }
 0x175   :  { %811 = vmatmul.msk.f32.gmra.mxu0 %vm385_vm9, %v621_v28 }
 0x1d3   :  { %v645_v41 = vpop.f32.mrf.mxu1 }
 0x1d8   :  { %v455_v25 = vpop.f32.mrf.mxu3  ;;  %v409_v11 = vpop.f32.mrf.mxu2 }
 0x1da   :  { %v478_v32 = vpop.f32.mrf.mxu0 }
 0x1db   :  { %v479_v38 = vadd.f32 %v478_v32, %v455_v25 }
 0x1dd   :  { %v1420_v8 = vmax.f32 %v479_v38, 0.0 }
 0x1df   :  { %560 = vrot.lane.b32.xlu1 %v1420_v8, %s1055_s14  ;;  %576 = vrot.lane.b32.xlu0 %v1420_v8, %s1054_s13 }
 0x1e0   :  { %592 = vrot.lane.b32.xlu2 %v1420_v8, %s1053_s6  ;;  %v458_v19 = vpop.f32.mrf.mxu3 }
 0x1e1   :  { %v412_v39 = vpop.f32.mrf.mxu2 }
 0x1e2   :  { %v481_v21 = vpop.f32.mrf.mxu0 }
 0x1e3   :  { %v482_v50 = vadd.f32 %v481_v21, %v458_v19 }
 0x1e5   :  { %v1434_v53 = vmax.f32 %v482_v50, 0.0 }
 0x1e7   :  { %512 = vrot.lane.b32.xlu1 %v1420_v8, %s1046_s20  ;;  %528 = vrot.lane.b32.xlu0 %v1420_v8, %s1058_s15 }
 0x1e8   :  { %544 = vrot.lane.b32.xlu2 %v1420_v8, %s1056_s1 }
 0x1e9   :  { %v432_v43 = vpop.f32.mrf.mxu2 }
 0x1ea   :  { %v433_v54 = vadd.f32 %v432_v43, %v409_v11 }
 0x1ec   :  { %v1448_v55 = vmax.f32 %v433_v54, 0.0 }
 0x1ef   :  { %578 = vrot.lane.b32.xlu1 %v1434_v53, %s1054_s13  ;;  %594 = vrot.lane.b32.xlu0 %v1434_v53, %s1053_s6 }
 0x1f0   :  { %562 = vrot.lane.b32.xlu2 %v1434_v53, %s1055_s14 }
 0x1f1   :  { %v435_v56 = vpop.f32.mrf.mxu2 }
 0x1f2   :  { %v436_v57 = vadd.f32 %v435_v56, %v412_v39 }
 0x1f4   :  { %v1462_v58 = vmax.f32 %v436_v57, 0.0 }
 0x1f7   :  { %530 = vrot.lane.b32.xlu1 %v1434_v53, %s1058_s15  ;;  %546 = vrot.lane.b32.xlu0 %v1434_v53, %s1056_s1 }
 0x1f8   :  { %514 = vrot.lane.b32.xlu2 %v1434_v53, %s1046_s20 }
 0x1ff   :  { %556 = vrot.lane.b32.xlu0 %v1448_v55, %s1055_s14  ;;  %588 = vrot.lane.b32.xlu1 %v1448_v55, %s1053_s6 }
 0x200   :  { %572 = vrot.lane.b32.xlu2 %v1448_v55, %s1054_s13 }
 0x207   :  { %508 = vrot.lane.b32.xlu0 %v1448_v55, %s1046_s20  ;;  %540 = vrot.lane.b32.xlu1 %v1448_v55, %s1056_s1 }
 0x208   :  { %524 = vrot.lane.b32.xlu2 %v1448_v55, %s1058_s15 }
 0x20f   :  { %574 = vrot.lane.b32.xlu0 %v1462_v58, %s1054_s13  ;;  %558 = vrot.lane.b32.xlu1 %v1462_v58, %s1055_s14 }
 0x210   :  { %590 = vrot.lane.b32.xlu2 %v1462_v58, %s1053_s6 }
 0x217   :  { %498 = vrot.lane.b32.xlu0 %v1434_v53, %s1059_s16  ;;  %492 = vrot.lane.b32.xlu1 %v1448_v55, %s1059_s16 }
 0x218   :  { %496 = vrot.lane.b32.xlu2 %v1420_v8, %s1059_s16 }
 0x21f   :  { %526 = vrot.lane.b32.xlu0 %v1462_v58, %s1058_s15  ;;  %510 = vrot.lane.b32.xlu1 %v1462_v58, %s1046_s20 }
 0x220   :  { %542 = vrot.lane.b32.xlu2 %v1462_v58, %s1056_s1 }
 0x227   :  { %606 = vrot.lane.b32.xlu0 %v1462_v58, %s1060_s17  ;;  %610 = vrot.lane.b32.xlu1 %v1434_v53, %s1060_s17 }
 0x228   :  { %494 = vrot.lane.b32.xlu2 %v1462_v58, %s1059_s16 }
 0x22f   :  { %608 = vrot.lane.b32.xlu0 %v1420_v8, %s1060_s17 }
 0x230   :  { %604 = vrot.lane.b32.xlu2 %v1448_v55, %s1060_s17 }
 0x23a   :  { %v593_v31 = vpop.permute.xlu2 %592 }
 0x242   :  { %v1492_v35 = vpop.permute.xlu2 %544 }
 0x24a   :  { %v563_v63 = vpop.permute.xlu2 %562 }
 0x251   :  { %v561_v0 = vpop.permute.xlu1 %560  ;;  %v577_v1 = vpop.permute.xlu0 %576 }
 0x252   :  { %v1494_v4 = vpop.permute.xlu2 %514 }
 0x259   :  { %v1496_v5 = vpop.permute.xlu1 %512  ;;  %v1498_v6 = vpop.permute.xlu0 %528 }
 0x25a   :  { %v573_v27 = vpop.permute.xlu2 %572 }
 0x25b   :  { %v580_v32 = vsel %vm327_vm2, %v573_v27, %v577_v1 }
 0x25c   :  { %v584_v39 = vmul.f32 %v580_v32, %v1252_v59 }
 0x261   :  { %v579_v10 = vpop.permute.xlu1 %578  ;;  %v595_v12 = vpop.permute.xlu0 %594 }
 0x262   :  { %v1500_v13 = vpop.permute.xlu2 %524 }
 0x269   :  { %v1502_v14 = vpop.permute.xlu1 %530  ;;  %v547_v15 = vpop.permute.xlu0 %546 }
 0x26a   :  { %v591_v16 = vpop.permute.xlu2 %590 }
 0x26b   :  { %v597_v18 = vsel %vm349_vm1, %v591_v16, %v595_v12  ;;  %v599_v22 = vsel %vm349_vm1, %v595_v12, %v591_v16 }
 0x26c   :  { %v602_v2 = vmul.f32 %v597_v18, %v1231_v46  ;;  %v603_v29 = vmul.f32 %v599_v22, %v1233_v47 }
 0x26e   :  { %680 = vmatpush.msra.mxu1 %v602_v2  ;;  %726 = vmatpush.msrb.mxu3 %v603_v29 }
 0x271   :  { %v557_v33 = vpop.permute.xlu0 %556  ;;  %v589_v40 = vpop.permute.xlu1 %588 }
 0x272   :  { %v596_v3 = vsel %vm349_vm1, %v589_v40, %v593_v31  ;;  %v598_v17 = vsel %vm349_vm1, %v593_v31, %v589_v40  ;;  %v1522_v48 = vpop.permute.xlu2 %496  ;;  %v564_v54 = vsel %vm305_vm3, %v557_v33, %v561_v0  ;;  %v566_v56 = vsel %vm305_vm3, %v561_v0, %v557_v33 }
 0x273   :  { %v600_v42 = vmul.f32 %v596_v3, %v1231_v46  ;;  %v601_v26 = vmul.f32 %v598_v17, %v1233_v47  ;;  %v582_v46 = vsel %vm327_vm2, %v577_v1, %v573_v27 }
 0x274   :  { %v585_v43 = vmul.f32 %v582_v46, %v1254_v60 }
 0x275   :  { %681 = vmatpush.msra.mxu1 %v600_v42  ;;  %727 = vmatpush.msrb.mxu3 %v601_v26 }
 0x279   :  { %v1520_v20 = vpop.permute.xlu0 %508  ;;  %v541_v45 = vpop.permute.xlu1 %540 }
 0x27a   :  { %v543_v1 = vpop.permute.xlu2 %542  ;;  %v516_v29 = vsel %vm239_vm7, %v1520_v20, %v1496_v5  ;;  %v518_v30 = vsel %vm239_vm7, %v1496_v5, %v1520_v20 }
 0x27b   :  { %v549_v0 = vsel %vm283_vm4, %v543_v1, %v547_v15  ;;  %v521_v5 = vmul.f32 %v516_v29, %v1355_v62 }
 0x281   :  { %v575_v49 = vpop.permute.xlu0 %574  ;;  %v559_v25 = vpop.permute.xlu1 %558 }
 0x282   :  { %v581_v47 = vsel %vm327_vm2, %v575_v49, %v579_v10  ;;  %v583_v38 = vsel %vm327_vm2, %v579_v10, %v575_v49  ;;  %v565_v21 = vsel %vm305_vm3, %v559_v25, %v563_v63  ;;  %v567_v50 = vsel %vm305_vm3, %v563_v63, %v559_v25  ;;  %v495_v33 = vpop.permute.xlu2 %494 }
 0x283   :  { %v586_v11 = vmul.f32 %v581_v47, %v1252_v59  ;;  %v587_v19 = vmul.f32 %v583_v38, %v1254_v60  ;;  %v570_v57 = vmul.f32 %v565_v21, %v1269_v7  ;;  %v571_v31 = vmul.f32 %v567_v50, %v1271_v9  ;;  %v489_v50 = vld [vmem:[#allocation11 + $0x8] sm:$0xff] }
 0x284   :  { %v568_v63 = vmul.f32 %v564_v54, %v1269_v7  ;;  %v569_v60 = vmul.f32 %v566_v56, %v1271_v9  ;;  %v551_v10 = vsel %vm283_vm4, %v547_v15, %v543_v1  ;;  %v548_v7 = vsel %vm283_vm4, %v541_v45, %v1492_v35 }
 0x285   :  { %682 = vmatpush.msra.mxu1 %v586_v11  ;;  %728 = vmatpush.msrb.mxu3 %v587_v19  ;;  %v550_v9 = vsel %vm283_vm4, %v1492_v35, %v541_v45  ;;  %v554_v12 = vmul.f32 %v551_v10, %v1306_v36  ;;  %v555_v15 = vmul.f32 %v549_v0, %v1308_v37 }
 0x286   :  { %v553_v18 = vmul.f32 %v548_v7, %v1308_v37  ;;  %v532_v35 = vsel %vm261_vm6, %v1500_v13, %v1498_v6 }
 0x287   :  { %683 = vmatpush.msra.mxu1 %v584_v39  ;;  %729 = vmatpush.msrb.mxu3 %v585_v43  ;;  %v491_v39 = vld [vmem:[#allocation11 + $0x18] sm:$0xff]  ;;  %v668_v43 = vpop.f32.mrf.mxu0 }
 0x289   :  { %v499_v59 = vpop.permute.xlu0 %498  ;;  %730 = vmatpush.msrb.mxu3 %v571_v31  ;;  %v493_v27 = vpop.permute.xlu1 %492  ;;  %684 = vmatpush.msra.mxu1 %v570_v57 }
 0x28a   :  { %v501_v3 = vsel %vm217_vm8, %v495_v33, %v499_v59  ;;  %v500_v26 = vsel %vm217_vm8, %v493_v27, %v1522_v48  ;;  %v502_v28 = vsel %vm217_vm8, %v1522_v48, %v493_v27  ;;  %v488_v48 = vld [vmem:[#allocation11] sm:$0xff]  ;;  %v605_v47 = vpop.permute.xlu2 %604 }
 0x28b   :  { %685 = vmatpush.msra.mxu1 %v568_v63  ;;  %731 = vmatpush.msrb.mxu3 %v569_v60  ;;  %v507_v25 = vmul.f32 %v501_v3, %v1378_v44  ;;  %v504_v32 = vmul.f32 %v502_v28, %v1376_v34  ;;  %v505_v46 = vmul.f32 %v500_v26, %v1378_v44  ;;  %v490_v44 = vld [vmem:[#allocation11 + $0x10] sm:$0xff] }
 0x28d   :  { %686 = vmatpush.msra.mxu1 %v1462_v58  ;;  %732 = vmatpush.msrb.mxu3 %v1434_v53  ;;  %v552_v58 = vmul.f32 %v550_v9, %v1306_v36 }
 0x28f   :  { %687 = vmatpush.msra.mxu1 %v1448_v55  ;;  %733 = vmatpush.msrb.mxu3 %v1420_v8  ;;  %v534_v8 = vsel %vm261_vm6, %v1498_v6, %v1500_v13  ;;  %v671_v54 = vpop.f32.mrf.mxu0 }
 0x290   :  { %v536_v13 = vmul.f32 %v534_v8, %v1336_v51 }
 0x291   :  { %v527_v16 = vpop.permute.xlu0 %526  ;;  %734 = vmatpush.msrb.mxu3 %v555_v15  ;;  %v511_v53 = vpop.permute.xlu1 %510  ;;  %688 = vmatpush.msra.mxu1 %v554_v12 }
 0x292   :  { %v533_v36 = vsel %vm261_vm6, %v527_v16, %v1502_v14  ;;  %v535_v55 = vsel %vm261_vm6, %v1502_v14, %v527_v16  ;;  %v517_v2 = vsel %vm239_vm7, %v511_v53, %v1494_v4  ;;  %v519_v6 = vsel %vm239_vm7, %v1494_v4, %v511_v53 }
 0x293   :  { %v538_v37 = vmul.f32 %v535_v55, %v1336_v51  ;;  %689 = vmatpush.msra.mxu1 %v552_v58  ;;  %735 = vmatpush.msrb.mxu3 %v553_v18  ;;  %v539_v22 = vmul.f32 %v533_v36, %v1338_v52  ;;  %v537_v14 = vmul.f32 %v532_v35, %v1338_v52 }
 0x294   :  { %v522_v40 = vmul.f32 %v519_v6, %v1353_v61  ;;  %v523_v51 = vmul.f32 %v517_v2, %v1355_v62  ;;  %v503_v52 = vsel %vm217_vm8, %v499_v59, %v495_v33  ;;  %v520_v4 = vmul.f32 %v518_v30, %v1353_v61 }
 0x295   :  { %690 = vmatpush.msra.mxu1 %v538_v37  ;;  %736 = vmatpush.msrb.mxu3 %v539_v22  ;;  %v506_v45 = vmul.f32 %v503_v52, %v1376_v34 }
 0x297   :  { %691 = vmatpush.msra.mxu1 %v536_v13  ;;  %737 = vmatpush.msrb.mxu3 %v537_v14 }
 0x299   :  { %v607_v17 = vpop.permute.xlu0 %606  ;;  %738 = vmatpush.msrb.mxu3 %v523_v51  ;;  %v611_v42 = vpop.permute.xlu1 %610  ;;  %692 = vmatpush.msra.mxu1 %v522_v40 }
 0x29a   :  { %v613_v61 = vsel %vm371_vm5, %v607_v17, %v611_v42  ;;  %v615_v20 = vsel %vm371_vm5, %v611_v42, %v607_v17 }
 0x29b   :  { %v618_v49 = vmul.f32 %v613_v61, %v1395_v23  ;;  %v619_v62 = vmul.f32 %v615_v20, %v1290_v24  ;;  %693 = vmatpush.msra.mxu1 %v520_v4  ;;  %739 = vmatpush.msrb.mxu3 %v521_v5 }
 0x29d   :  { %694 = vmatpush.msra.mxu1 %v506_v45  ;;  %717 = vmatpush.msra.mxu2 %v618_v49 }
 0x29e   :  { %740 = vmatpush.msrb.mxu3 %v507_v25  ;;  %763 = vmatpush.msrb.mxu0 %v619_v62 }
 0x29f   :  { %695 = vmatpush.msra.mxu1 %v504_v32 }
 0x2a0   :  { %741 = vmatpush.msrb.mxu3 %v505_v46  ;;  %696 = vmatmul.f32.vlgmr.msra.gmra.mxu1 %v488_v48 }
 0x2a1   :  { %742 = vmatmul.f32.vlgmr.msrb.gmra.mxu3 %v488_v48  ;;  %v609_v38 = vpop.permute.xlu0 %608 }
 0x2a2   :  { %v612_v11 = vsel %vm371_vm5, %v605_v47, %v609_v38  ;;  %v614_v19 = vsel %vm371_vm5, %v609_v38, %v605_v47 }
 0x2a3   :  { %v616_v34 = vmul.f32 %v612_v11, %v1395_v23  ;;  %v617_v21 = vmul.f32 %v614_v19, %v1290_v24  ;;  %v648_v23 = vpop.f32.mrf.mxu1 }
 0x2a5   :  { %718 = vmatpush.msra.mxu2 %v616_v34  ;;  %764 = vmatpush.msrb.mxu0 %v617_v21 }
 0x2a6   :  { %812 = vmatmul.msk.f32.vlgmr.msra.gmra.mxu2 %vm385_vm9, %v489_v50  ;;  %814 = vmatmul.msk.f32.vlgmr.msrb.gmra.mxu0 %vm385_vm9, %v489_v50 }
 0x2a8   :  { %699 = vmatmul.f32.gmra.mxu1 %v490_v44 }
 0x2a9   :  { %745 = vmatmul.f32.gmra.mxu3 %v490_v44 }
 0x2ae   :  { %813 = vmatmul.msk.f32.gmra.mxu2 %vm385_vm9, %v491_v39  ;;  %815 = vmatmul.msk.f32.gmra.mxu0 %vm385_vm9, %v491_v39 }
 0x31d   :  { %v697_v24 = vpop.f32.mrf.mxu1 }
 0x31e   :  { %v698_v63 = vadd.f32 %v697_v24, %v645_v41 }
 0x323   :  { %v766_v56 = vpop.f32.mrf.mxu0 }
 0x324   :  { %v743_v57 = vpop.f32.mrf.mxu3 }
 0x325   :  { %v744_v31 = vadd.f32 %v743_v57, %v668_v43  ;;  %v700_v9 = vpop.f32.mrf.mxu1 }
 0x326   :  { %v701_v58 = vadd.f32 %v700_v9, %v648_v23 }
 0x327   :  { %v767_v1 = vadd.f32 %v766_v56, %v744_v31 }
 0x329   :  { %v773_v59 = vmax.f32 %v767_v1, 0.0  ;;  %v720_v27 = vpop.f32.mrf.mxu2 }
 0x32a   :  { %v721_v60 = vadd.f32 %v720_v27, %v698_v63 }
 0x32b   :  { %777 = vst [vmem:[#allocation14 + $0x8] sm:$0xff] %v773_v59  ;;  %v769_v7 = vpop.f32.mrf.mxu0 }
 0x32c   :  { %v772_v0 = vmax.f32 %v721_v60, 0.0  ;;  %v746_v10 = vpop.f32.mrf.mxu3 }
 0x32d   :  { %v747_v12 = vadd.f32 %v746_v10, %v671_v54 }
 0x32e   :  { %776 = vst [vmem:[#allocation14] sm:$0xff] %v772_v0 }
 0x32f   :  { %v770_v15 = vadd.f32 %v769_v7, %v747_v12 }
 0x331   :  { %v775_v16 = vmax.f32 %v770_v15, 0.0  ;;  %v723_v53 = vpop.f32.mrf.mxu2 }
 0x332   :  { %v724_v18 = vadd.f32 %v723_v53, %v701_v58 }
 0x333   :  { %779 = vst [vmem:[#allocation14 + $0x18] sm:$0xff] %v775_v16 }
 0x334   :  { %v774_v35 = vmax.f32 %v724_v18, 0.0 }
 0x336   :  { %778 = vst [vmem:[#allocation14 + $0x10] sm:$0xff] %v774_v35 }
 0x337   :  { %792 = dma.vmem_to_hbm [thread:$0]  %s785_s3, 512, %s787_s23, [#allocation4], %s1045_s19, %s1045_s19, %s1046_s20  }
 0x338   :  { %1038 = dma.done.wait [#allocation4], 512  }
 0x339   :  { %1039 = vsyncadd [#allocation4], 4294966784 }
 0x33a   :  { %797 = vsyncpa [#allocation3], 1 }
 0x33b   :  { %798 = vsyncpa [#allocation6], 1 }
 0x33c   :  { %799 = vsyncpa [#allocation9], 1 }
 0x33d   :  { %800 = vsyncpa [#allocation12], 1 }
 0x33e   :  { %801 = vsyncpa [#allocation4], 1 }

</bundles_post_ra>
